<compile_context>
chip_gen: v7x
topology: tpu7x:2x2x1
jax: 0.10.0
libtpu: 0.0.40
codegen_flags: <defaults>
</compile_context>

<pallas_src>
import functools

import jax
import jax.numpy as jnp
from jax.experimental import pallas as pl
from jax.experimental.pallas import tpu as pltpu


def _round_up(v, m):
    return (v + m - 1) // m * m


def _linear_kernel(x_ref, wt_ref, b_ref, o_ref):
    # x_ref : (tb, K)  natural batch-major layout (no wrapper transpose)
    # wt_ref: (K, N)   VMEM-resident across grid steps (constant index_map)
    # b_ref : (1, N)   VMEM-resident, broadcast along batch rows
    # o_ref : (tb, N)  natural layout output
    acc = jnp.dot(
        x_ref[...],
        wt_ref[...],
        preferred_element_type=jnp.float32,
        precision=jax.lax.Precision.HIGHEST,   # full-f32 accumulation
    )
    o_ref[...] = (acc + b_ref[...]).astype(o_ref.dtype)


@functools.partial(jax.jit, static_argnames=("block_b", "xla_fallback_below"))
def patchifier_forward(x, weight, bias, *, block_b=8192, xla_fallback_below=0):
    """x: (B, 20) f32, weight: (4, 20) f32, bias: (4,) f32 -> (B, 4) f32."""
    B, K = x.shape
    N, K2 = weight.shape
    assert K == K2

    # Production small-batch dispatch: a fused XLA matmul+bias beats a
    # dedicated kernel when B is below ~a tile.  Default 0 => always kernel.
    if B < xla_fallback_below:
        return x @ weight.T + bias

    # Batch tile: multiple of 8 (sublane rule), capped at block_b.
    tb = min(_round_up(block_b, 8), _round_up(B, 8))
    b_pad = _round_up(B, tb)

    x_p = jnp.pad(x, ((0, b_pad - B), (0, 0)))   # (b_pad, K); pad rows get bias only
    wt = weight.T                                # (K, N) — 320 B, negligible
    b2 = bias.reshape(1, N)                      # (1, N)

    cost = pl.CostEstimate(
        flops=2 * B * K * N,
        transcendentals=0,
        bytes_accessed=(B * K + B * N + K * N + N) * 4,
    )

    out = pl.pallas_call(
        _linear_kernel,
        out_shape=jax.ShapeDtypeStruct((b_pad, N), x.dtype),
        grid=(b_pad // tb,),
        in_specs=[
            pl.BlockSpec((tb, K), lambda i: (i, 0)),   # stream batch tiles
            pl.BlockSpec((K, N), lambda i: (0, 0)),    # weights stay resident
            pl.BlockSpec((1, N), lambda i: (0, 0)),    # bias stays resident
        ],
        out_specs=pl.BlockSpec((tb, N), lambda i: (i, 0)),
        compiler_params=pltpu.CompilerParams(
            dimension_semantics=("parallel",),          # megacore on v7x
            vmem_limit_bytes=32 * 1024 * 1024,          # ~16.8 MiB used @ tb=8192
        ),
        cost_estimate=cost,
    )(x_p, wt, b2)

    # Drop batch padding.
    return out[:B]


if __name__ == "__main__":
    key = jax.random.PRNGKey(0)
    kx, kw, kb = jax.random.split(key, 3)

    B, IN, OUT = 8, 20, 4

    # Deterministic params (mimic nn.Linear default init range).
    bound = 1.0 / jnp.sqrt(jnp.float32(IN))
    weight = jax.random.uniform(kw, (OUT, IN), jnp.float32, -bound, bound)
    bias = jax.random.uniform(kb, (OUT,), jnp.float32, -bound, bound)

    # Small-shape check (single tile).
    x = jax.random.normal(kx, (B, IN), jnp.float32)
    out = jax.block_until_ready(patchifier_forward(x, weight, bias))
    ref = x @ weight.T + bias
    assert out.shape == (B, OUT)
    assert jnp.allclose(out, ref, atol=1e-5, rtol=1e-5)

    # Multi-tile + ragged-tail check (exercises grid, padding, unpad path).
    B2 = 300
    x2 = jax.random.normal(jax.random.PRNGKey(1), (B2, IN), jnp.float32)
    out2 = jax.block_until_ready(
        patchifier_forward(x2, weight, bias, block_b=128))
    ref2 = x2 @ weight.T + bias
    assert out2.shape == (B2, OUT)
    assert jnp.allclose(out2, ref2, atol=1e-5, rtol=1e-5)

    print("KERNEL_OK")
</pallas_src>

<mosaic_0001>
module attributes {stable_mosaic.version = 11 : i64} {
  func.func @_linear_kernel(%arg0: i32, %arg1: memref<8x20xf32, #tpu.memory_space<vmem>>, %arg2: memref<20x4xf32, #tpu.memory_space<vmem>>, %arg3: memref<1x4xf32, #tpu.memory_space<vmem>>, %arg4: memref<8x4xf32, #tpu.memory_space<vmem>>) attributes {dimension_semantics = [#tpu.dimension_semantics<parallel>], iteration_bounds = array<i64: 1>, scalar_prefetch = 0 : i64, scratch_operands = 0 : i64, tpu.core_type = #tpu.core_type<tc>, window_params = [{transform_indices = @transform_0, window_bounds = array<i64: 8, 20>}, {pipeline_mode = #tpu.pipeline_mode<synchronous>, transform_indices = @transform_1, window_bounds = array<i64: 20, 4>}, {pipeline_mode = #tpu.pipeline_mode<synchronous>, transform_indices = @transform_2, window_bounds = array<i64: 1, 4>}, {transform_indices = @transform_3, window_bounds = array<i64: 8, 4>}]} {
    %c0 = arith.constant 0 : index
    %c0_0 = arith.constant 0 : index
    %0 = vector.load %arg1[%c0, %c0_0] : memref<8x20xf32, #tpu.memory_space<vmem>>, vector<8x20xf32>
    %c0_1 = arith.constant 0 : index
    %c0_2 = arith.constant 0 : index
    %1 = vector.load %arg2[%c0_1, %c0_2] : memref<20x4xf32, #tpu.memory_space<vmem>>, vector<20x4xf32>
    %cst = arith.constant dense<0.000000e+00> : vector<8x4xf32>
    %2 = tpu.matmul %0, %1, %cst {dimension_numbers = #tpu.dot_dimension_numbers<[1], [0], [0], [1], [0, 0, 1, 1], [], []>, precision = #tpu.contract_precision<fp32>} : vector<8x20xf32>, vector<20x4xf32>, vector<8x4xf32> -> vector<8x4xf32>
    %c0_3 = arith.constant 0 : index
    %c0_4 = arith.constant 0 : index
    %3 = vector.load %arg3[%c0_3, %c0_4] : memref<1x4xf32, #tpu.memory_space<vmem>>, vector<1x4xf32>
    %4 = vector.broadcast %3 : vector<1x4xf32> to vector<8x4xf32>
    %5 = arith.addf %2, %4 : vector<8x4xf32>
    %c0_5 = arith.constant 0 : index
    %c0_6 = arith.constant 0 : index
    %6 = vector.load %arg4[%c0_5, %c0_6] : memref<8x4xf32, #tpu.memory_space<vmem>>, vector<8x4xf32>
    tpu.vector_store %arg4[%c0_5, %c0_6], %5 {strides = array<i32>} : memref<8x4xf32, #tpu.memory_space<vmem>>, vector<8x4xf32>,
    return
  }
  func.func @transform_0(%arg0: i32) -> (i32, i32) {
    %c0_i32 = arith.constant 0 : i32
    %c0_i32_0 = arith.constant 0 : i32
    return %arg0, %c0_i32 : i32, i32
  }
  func.func @transform_1(%arg0: i32) -> (i32, i32) {
    %c0_i32 = arith.constant 0 : i32
    %c0_i32_0 = arith.constant 0 : i32
    %c0_i32_1 = arith.constant 0 : i32
    return %c0_i32, %c0_i32_0 : i32, i32
  }
  func.func @transform_2(%arg0: i32) -> (i32, i32) {
    %c0_i32 = arith.constant 0 : i32
    %c0_i32_0 = arith.constant 0 : i32
    %c0_i32_1 = arith.constant 0 : i32
    return %c0_i32, %c0_i32_0 : i32, i32
  }
  func.func @transform_3(%arg0: i32) -> (i32, i32) {
    %c0_i32 = arith.constant 0 : i32
    %c0_i32_0 = arith.constant 0 : i32
    return %arg0, %c0_i32 : i32, i32
  }
}

</mosaic_0001>

<bundles_post_ra>
// kernel: patchifier_forward.1
= control target key start
LH: loop header
LB: loop body
LE: loop exit
PB: predicated region body
PF: predicated region fallthrough
CT: control target
= control target key end

     0   :  { %vm29_vm0 = vcmask 1043456   ;;  %v621_v0 = vmov 0.0|0.0   ;;  %vm25_vm1 = vcmask 162816   ;;  %vm622_vm2 = vmmov 0   ;;  %s668_s1 = inlined_call_operand.vmem [shape: f32[20,4], index: 1, kind: input, shape index: {}]   ;;  %s669_s0 = inlined_call_operand.vmem [shape: f32[8,20], index: 0, kind: input, shape index: {}]   ;;  %s670_s2 = inlined_call_operand.vmem [shape: f32[1,4], index: 2, kind: input, shape index: {}]   ;;  %s671_s3 = inlined_call_operand.vmem [shape: f32[8,4], index: 3, kind: output, shape index: {}]  }
   0x1   :  { %599 = vmatprep.subr.bf16.mxu0 %v621_v0  ;;  %v15_v1 = vld [vmem:[%s668_s1] sm:$0xff]  ;;  %v16_v2 = vld [vmem:[%s668_s1 + $0x8] sm:$0xff]  ;;  %590 = vmatprep.subr.bf16.mxu1 %v621_v0  ;;  %v17_v3 = vld [vmem:[%s668_s1 + $0x10] sm:$0xf]  ;;  %v623_v7 = vmov 0.0   ;;  %vm505_vm3 = vcmask 31744  }
   0x2   :  { %v34_v4 = vand.u32 4294901760, %v15_v1  ;;  %v37_v5 = vand.u32 4294901760, %v16_v2  ;;  %v31_v6 = vsel %vm29_vm0, %v17_v3, 0  ;;  %569 = vmatprep.mubr.msk.f32.mxu0 %vm622_vm2, %v623_v7  ;;  %v14_v8 = vld [vmem:[%s669_s0] sm:$0xff]  ;;  %542 = vmatprep.mubr.msk.f32.mxu1 %vm622_vm2, %v623_v7 }
   0x3   :  { %v40_v9 = vand.u32 4294901760, %v31_v6  ;;  %v27_v10 = vsel %vm25_vm1, %v14_v8, 0  ;;  %v511_v34 = vld [vmem:[%s670_s2] ss:$0 sm:$0xff] }
   0x4   :  { %v591_v11 = vpack.c.bf16 %v37_v5, %v34_v4  ;;  %v113_v12 = vsub.f32 %v15_v1, %v34_v4  ;;  %v120_v13 = vsub.f32 %v16_v2, %v37_v5  ;;  %v101_v14 = vand.u32 4294901760, %v27_v10 }
   0x5   :  { %v127_v15 = vsub.f32 %v31_v6, %v40_v9 }
   0x6   :  { %601 = vmatpush3.bf16.msra.mxu0 %v591_v11  ;;  %592 = vmatpush3.bf16.msra.mxu1 %v591_v11  ;;  %v102_v16 = vsub.f32 %v27_v10, %v101_v14  ;;  %v114_v17 = vand.u32 4294901760, %v113_v12  ;;  %v121_v18 = vand.u32 4294901760, %v120_v13  ;;  %v597_v31 = vpack.c.bf16 %v120_v13, %v113_v12 }
   0x7   :  { %567 = vmatprep.subr.mxu0 %v623_v7  ;;  %540 = vmatprep.subr.mxu1 %v623_v7  ;;  %v128_v19 = vand.u32 4294901760, %v127_v15 }
   0x8   :  { %v103_v20 = vand.u32 4294901760, %v102_v16  ;;  %v115_v21 = vsub.f32 %v113_v12, %v114_v17  ;;  %v122_v22 = vsub.f32 %v120_v13, %v121_v18  ;;  %v603_v23 = vpack.c.bf16 %v121_v18, %v114_v17 }
   0x9   :  { %v129_v27 = vsub.f32 %v127_v15, %v128_v19 }
   0xa   :  { %568 = vmatpush3.msra.mxu0 %v40_v9  ;;  %541 = vmatpush3.msra.mxu1 %v40_v9  ;;  %v104_v24 = vsub.f32 %v102_v16, %v103_v20  ;;  %v116_v25 = vand.u32 4294901760, %v115_v21  ;;  %v123_v26 = vand.u32 4294901760, %v122_v22 }
   0xb   :  { %570 = vmatmul.mubr.f32.vlgmr.msra.gmra.mrb[0].mxu0 %v103_v20  ;;  %593 = vmatprep.subr.bf16.mxu1 %v621_v0  ;;  %v130_v30 = vand.u32 4294901760, %v129_v27 }
   0xc   :  { %v105_v28 = vand.u32 4294901760, %v104_v24  ;;  %602 = vmatprep.subr.bf16.mxu0 %v621_v0  ;;  %v594_v29 = vpack.c.bf16 %v123_v26, %v116_v25  ;;  %578 = vmatprep.mubr.msk.f32.mxu0 %vm622_vm2, %v623_v7 }
   0xd   :  { %604 = vmatpush3.bf16.msra.mxu0 %v603_v23 }
   0xe   :  { %543 = vmatmul.mubr.f32.vlgmr.msra.gmra.mrb[0].mxu1 %v105_v28  ;;  %576 = vmatprep.subr.mxu0 %v623_v7 }
   0xf   :  { %595 = vmatpush3.bf16.msra.mxu1 %v594_v29  ;;  %551 = vmatprep.mubr.msk.f32.mxu1 %vm622_vm2, %v623_v7 }
  0x10   :  { %549 = vmatprep.subr.mxu1 %v623_v7 }
  0x11   :  { %577 = vmatpush3.msra.mxu0 %v128_v19 }
  0x12   :  { %605 = vmatprep.subr.bf16.mxu0 %v621_v0 }
  0x13   :  { %550 = vmatpush3.msra.mxu1 %v130_v30  ;;  %579 = vmatmul.mubr.f32.vlgmr.msra.gmra.mrb[0].mxu0 %v101_v14 }
  0x14   :  { %596 = vmatprep.subr.bf16.mxu1 %v621_v0  ;;  %607 = vmatpush3.bf16.msra.mxu0 %v591_v11 }
  0x15   :  { %585 = vmatprep.subr.mxu0 %v623_v7  ;;  %587 = vmatprep.mubr.msk.f32.mxu0 %vm622_vm2, %v623_v7 }
  0x16   :  { %552 = vmatmul.mubr.f32.vlgmr.msra.gmra.mrb[0].mxu1 %v101_v14 }
  0x17   :  { %598 = vmatpush3.bf16.msra.mxu1 %v597_v31  ;;  %560 = vmatprep.mubr.msk.f32.mxu1 %vm622_vm2, %v623_v7 }
  0x18   :  { %558 = vmatprep.subr.mxu1 %v623_v7  ;;  %586 = vmatpush3.msra.mxu0 %v40_v9 }
  0x1b   :  { %559 = vmatpush3.msra.mxu1 %v127_v15  ;;  %588 = vmatmul.mubr.f32.vlgmr.msra.gmra.mrb[0].mxu0 %v101_v14 }
  0x1e   :  { %561 = vmatmul.mubr.f32.vlgmr.msra.gmra.mrb[0].mxu1 %v102_v16 }
  0xee   :  { %v501_v32 = vpop.f32.mrb[0].mxu0 }
  0xef   :  { %v589_v33 = vpop.f32.mrb[1].mxu0 }
  0xf1   :  { %v271_v35 = vpop.f32.mrb[0].mxu1 }
  0xf2   :  { %v608_v36 = vadd.f32 %v511_v34, %v271_v35  ;;  %v562_v37 = vpop.f32.mrb[1].mxu1 }
  0xf4   :  { %v609_v38 = vadd.f32 %v608_v36, %v501_v32 }
  0xf6   :  { %506 = vst.msk [vmem:[%s671_s3] sm:$0xff] %vm505_vm3, %v609_v38 }

</bundles_post_ra>
